<compile_context>
chip_gen: v6e
topology: v6e:2x2x1
jax: 0.10.0
libtpu: 0.0.40
codegen_flags: <defaults>
</compile_context>

<pallas_src>
import functools

import jax
import jax.numpy as jnp
from jax.experimental import pallas as pl
from jax.experimental.pallas import tpu as pltpu

BN_EPS = 1e-5


def _round_up(x, m):
    return (x + m - 1) // m * m


# ---------------------------------------------------------------------------
# Parameter packing: one (rows, width) f32 slab, 8-row-aligned sub-blocks.
# ---------------------------------------------------------------------------
_PACK_ORDER = ("w1", "w2x", "w2a", "w3", "b1", "gamma", "beta", "b2", "b3")


def pack_offsets(state_size, action_size, fc1_units, fc2_units):
    rows = {
        "w1": state_size, "w2x": fc1_units, "w2a": action_size, "w3": 1,
        "b1": 1, "gamma": 1, "beta": 1, "b2": 1, "b3": 1,
    }
    offs, cur = {}, 0
    for name in _PACK_ORDER:
        offs[name] = cur
        cur = _round_up(cur + rows[name], 8)   # align next param to sublane tile
    width = max(fc1_units, fc2_units)
    return offs, cur, width


def pack_params(params, state_size, action_size, fc1_units, fc2_units):
    offs, total_rows, width = pack_offsets(state_size, action_size,
                                           fc1_units, fc2_units)
    slab = jnp.zeros((total_rows, width), jnp.float32)

    def put(s, name, arr):
        r, c = arr.shape
        return s.at[offs[name]:offs[name] + r, 0:c].set(arr)

    slab = put(slab, "w1", params["w1"])
    slab = put(slab, "w2x", params["w2x"])
    slab = put(slab, "w2a", params["w2a"])
    slab = put(slab, "w3", params["w3"].reshape(1, -1))   # pre-transposed row
    slab = put(slab, "b1", params["b1"])
    slab = put(slab, "gamma", params["gamma"])
    slab = put(slab, "beta", params["beta"])
    slab = put(slab, "b2", params["b2"])
    slab = put(slab, "b3", params["b3"])
    return slab, offs


# ---------------------------------------------------------------------------
# Kernel: single grid point, everything resident in VMEM.
# ---------------------------------------------------------------------------
def critic_kernel(state_ref, action_ref, params_ref, out_ref, *, dims, offs):
    state_size, action_size, fc1, fc2 = dims
    state = state_ref[...]
    action = action_ref[...]

    # --- carve the packed parameter slab (static, 8-aligned slices) --------
    w1    = params_ref[offs["w1"]:offs["w1"] + state_size, 0:fc1]
    w2x   = params_ref[offs["w2x"]:offs["w2x"] + fc1, 0:fc2]
    w2a   = params_ref[offs["w2a"]:offs["w2a"] + action_size, 0:fc2]
    w3row = params_ref[offs["w3"]:offs["w3"] + 1, 0:fc2]
    b1    = params_ref[offs["b1"]:offs["b1"] + 1, 0:fc1]
    gamma = params_ref[offs["gamma"]:offs["gamma"] + 1, 0:fc1]
    beta  = params_ref[offs["beta"]:offs["beta"] + 1, 0:fc1]
    b2    = params_ref[offs["b2"]:offs["b2"] + 1, 0:fc2]
    b3    = params_ref[offs["b3"]:offs["b3"] + 1, 0:1]

    # ---- fc1 + ReLU (MXU) --------------------------------------------------
    h1 = jnp.dot(state, w1, preferred_element_type=jnp.float32) + b1
    h1 = jnp.maximum(h1, 0.0)

    # ---- BatchNorm1d (training mode: batch mean / biased batch var) -------
    mean = jnp.mean(h1, axis=0, keepdims=True)
    d = h1 - mean
    var = jnp.mean(d * d, axis=0, keepdims=True)
    scale = gamma * jax.lax.rsqrt(var + BN_EPS)          # rsqrt -> EUP slot
    xbn = d * scale + beta

    # ---- fc2 over concat([xbn, action], 1): split matmul + VPU FMAs -------
    h2 = jnp.dot(xbn, w2x, preferred_element_type=jnp.float32) + b2
    for i in range(action_size):                          # K=2: unrolled FMAs
        h2 = h2 + action[:, i:i + 1] * w2a[i:i + 1, :]
    h2 = jnp.maximum(h2, 0.0)

    # ---- fc3 (output width 1): VPU multiply + lane reduction, no MXU ------
    out_ref[...] = jnp.sum(h2 * w3row, axis=1, keepdims=True) + b3


# ---------------------------------------------------------------------------
# Wrapper
# ---------------------------------------------------------------------------
def critic_forward(state, action, param_slab, offs, dims):
    B = state.shape[0]
    state_size, action_size, fc1, fc2 = dims
    vmem = pl.BlockSpec(memory_space=pltpu.MemorySpace.VMEM)

    flops = 2 * B * (state_size * fc1 + (fc1 + action_size) * fc2 + fc2)
    bytes_accessed = 4 * (state.size + action.size + param_slab.size + B)
    kernel = functools.partial(critic_kernel, dims=dims, offs=offs)

    return pl.pallas_call(
        kernel,
        out_shape=jax.ShapeDtypeStruct((B, 1), jnp.float32),
        in_specs=[vmem, vmem, vmem],
        out_specs=vmem,
        cost_estimate=pl.CostEstimate(
            flops=flops, transcendentals=fc1, bytes_accessed=bytes_accessed),
    )(state, action, param_slab)


# ---------------------------------------------------------------------------
# Init (mirrors the PyTorch module's init ranges) and pure-JAX reference.
# ---------------------------------------------------------------------------
def init_params(key, state_size, action_size, fc1_units, fc2_units):
    ks = jax.random.split(key, 8)
    # hidden_init uses weight.size()[0] == out_features in PyTorch.
    lim1 = 1.0 / jnp.sqrt(fc1_units)
    lim2 = 1.0 / jnp.sqrt(fc2_units)
    # Linear default bias init range: 1/sqrt(in_features).
    blim1 = 1.0 / jnp.sqrt(state_size)
    blim2 = 1.0 / jnp.sqrt(fc1_units + action_size)
    blim3 = 1.0 / jnp.sqrt(fc2_units)
    w2_full = jax.random.uniform(ks[2], (fc1_units + action_size, fc2_units),
                                 jnp.float32, -lim2, lim2)
    return {
        "w1": jax.random.uniform(ks[0], (state_size, fc1_units), jnp.float32,
                                 -lim1, lim1),
        "b1": jax.random.uniform(ks[1], (1, fc1_units), jnp.float32,
                                 -blim1, blim1),
        "gamma": jnp.ones((1, fc1_units), jnp.float32),   # BatchNorm1d default
        "beta": jnp.zeros((1, fc1_units), jnp.float32),
        "w2x": w2_full[:fc1_units, :],
        "w2a": w2_full[fc1_units:, :],
        "b2": jax.random.uniform(ks[3], (1, fc2_units), jnp.float32,
                                 -blim2, blim2),
        "w3": jax.random.uniform(ks[4], (fc2_units, 1), jnp.float32,
                                 -0.003, 0.003),
        "b3": jax.random.uniform(ks[5], (1, 1), jnp.float32, -blim3, blim3),
    }


def critic_reference(state, action, p):
    h1 = jnp.maximum(state @ p["w1"] + p["b1"], 0.0)
    mean = jnp.mean(h1, axis=0, keepdims=True)
    var = jnp.mean((h1 - mean) ** 2, axis=0, keepdims=True)
    xbn = (h1 - mean) / jnp.sqrt(var + BN_EPS) * p["gamma"] + p["beta"]
    h2 = jnp.maximum(xbn @ p["w2x"] + action @ p["w2a"] + p["b2"], 0.0)
    return h2 @ p["w3"] + p["b3"]


if __name__ == "__main__":
    # Tennis env sizes (small): 24-dim state, 2-dim action, small hidden layers.
    B, STATE, ACTION, FC1, FC2 = 8, 24, 2, 32, 32

    key = jax.random.PRNGKey(0)
    k_state, k_action, k_params = jax.random.split(key, 3)

    state = jax.random.normal(k_state, (B, STATE), jnp.float32)
    action = jax.random.uniform(k_action, (B, ACTION), jnp.float32, -1.0, 1.0)
    params = init_params(k_params, STATE, ACTION, FC1, FC2)

    slab, offs = pack_params(params, STATE, ACTION, FC1, FC2)
    dims = (STATE, ACTION, FC1, FC2)

    out = critic_forward(state, action, slab, offs, dims)
    out = jax.block_until_ready(out)

    ref = critic_reference(state, action, params)
    assert out.shape == (B, 1)
    assert jnp.allclose(out, ref, atol=1e-4, rtol=1e-4), "mismatch vs reference"

    print("KERNEL_OK")
</pallas_src>

<mosaic_0001>
module attributes {stable_mosaic.version = 11 : i64} {
  func.func @critic_kernel(%arg0: memref<8x24xf32, #tpu.memory_space<vmem>>, %arg1: memref<8x2xf32, #tpu.memory_space<vmem>>, %arg2: memref<112x32xf32, #tpu.memory_space<vmem>>, %arg3: memref<8x1xf32, #tpu.memory_space<vmem>>) attributes {dimension_semantics = [], scalar_prefetch = 0 : i64, scratch_operands = 0 : i64, tpu.core_type = #tpu.core_type<tc>} {
    %c0 = arith.constant 0 : index
    %c0_0 = arith.constant 0 : index
    %0 = vector.load %arg0[%c0, %c0_0] : memref<8x24xf32, #tpu.memory_space<vmem>>, vector<8x24xf32>
    %c0_1 = arith.constant 0 : index
    %c0_2 = arith.constant 0 : index
    %1 = vector.load %arg1[%c0_1, %c0_2] : memref<8x2xf32, #tpu.memory_space<vmem>>, vector<8x2xf32>
    %c0_3 = arith.constant 0 : index
    %c0_4 = arith.constant 0 : index
    %2 = vector.load %arg2[%c0_3, %c0_4] : memref<112x32xf32, #tpu.memory_space<vmem>>, vector<24x32xf32>
    %c24 = arith.constant 24 : index
    %c0_5 = arith.constant 0 : index
    %3 = vector.load %arg2[%c24, %c0_5] : memref<112x32xf32, #tpu.memory_space<vmem>>, vector<32x32xf32>
    %c56 = arith.constant 56 : index
    %c0_6 = arith.constant 0 : index
    %4 = vector.load %arg2[%c56, %c0_6] : memref<112x32xf32, #tpu.memory_space<vmem>>, vector<2x32xf32>
    %c64 = arith.constant 64 : index
    %c0_7 = arith.constant 0 : index
    %5 = vector.load %arg2[%c64, %c0_7] : memref<112x32xf32, #tpu.memory_space<vmem>>, vector<1x32xf32>
    %c72 = arith.constant 72 : index
    %c0_8 = arith.constant 0 : index
    %6 = vector.load %arg2[%c72, %c0_8] : memref<112x32xf32, #tpu.memory_space<vmem>>, vector<1x32xf32>
    %c80 = arith.constant 80 : index
    %c0_9 = arith.constant 0 : index
    %7 = vector.load %arg2[%c80, %c0_9] : memref<112x32xf32, #tpu.memory_space<vmem>>, vector<1x32xf32>
    %c88 = arith.constant 88 : index
    %c0_10 = arith.constant 0 : index
    %8 = vector.load %arg2[%c88, %c0_10] : memref<112x32xf32, #tpu.memory_space<vmem>>, vector<1x32xf32>
    %c96 = arith.constant 96 : index
    %c0_11 = arith.constant 0 : index
    %9 = vector.load %arg2[%c96, %c0_11] : memref<112x32xf32, #tpu.memory_space<vmem>>, vector<1x32xf32>
    %c104 = arith.constant 104 : index
    %c0_12 = arith.constant 0 : index
    %10 = vector.load %arg2[%c104, %c0_12] : memref<112x32xf32, #tpu.memory_space<vmem>>, vector<1x1xf32>
    %cst = arith.constant dense<0.000000e+00> : vector<8x32xf32>
    %11 = tpu.matmul %0, %2, %cst {dimension_numbers = #tpu.dot_dimension_numbers<[1], [0], [0], [1], [0, 0, 1, 1], [], []>} : vector<8x24xf32>, vector<24x32xf32>, vector<8x32xf32> -> vector<8x32xf32>
    %12 = vector.broadcast %6 : vector<1x32xf32> to vector<8x32xf32>
    %13 = arith.addf %11, %12 : vector<8x32xf32>
    %cst_13 = arith.constant 0.000000e+00 : f32
    %14 = vector.broadcast %cst_13 : f32 to vector<8x32xf32>
    %15 = arith.maximumf %13, %14 : vector<8x32xf32>
    %cst_14 = arith.constant dense<0.000000e+00> : vector<32xf32>
    %16 = vector.multi_reduction <add>, %15, %cst_14 [0] : vector<8x32xf32> to vector<32xf32>
    %17 = vector.shape_cast %16 : vector<32xf32> to vector<1x32xf32>
    %cst_15 = arith.constant 8.000000e+00 : f32
    %18 = vector.broadcast %cst_15 : f32 to vector<1x32xf32>
    %19 = arith.divf %17, %18 : vector<1x32xf32>
    %20 = vector.broadcast %19 : vector<1x32xf32> to vector<8x32xf32>
    %21 = arith.subf %15, %20 : vector<8x32xf32>
    %22 = arith.mulf %21, %21 : vector<8x32xf32>
    %cst_16 = arith.constant dense<0.000000e+00> : vector<32xf32>
    %23 = vector.multi_reduction <add>, %22, %cst_16 [0] : vector<8x32xf32> to vector<32xf32>
    %24 = vector.shape_cast %23 : vector<32xf32> to vector<1x32xf32>
    %cst_17 = arith.constant 8.000000e+00 : f32
    %25 = vector.broadcast %cst_17 : f32 to vector<1x32xf32>
    %26 = arith.divf %24, %25 : vector<1x32xf32>
    %cst_18 = arith.constant 9.99999974E-6 : f32
    %27 = vector.broadcast %cst_18 : f32 to vector<1x32xf32>
    %28 = arith.addf %26, %27 : vector<1x32xf32>
    %29 = math.rsqrt %28 : vector<1x32xf32>
    %30 = arith.mulf %7, %29 : vector<1x32xf32>
    %31 = vector.broadcast %30 : vector<1x32xf32> to vector<8x32xf32>
    %32 = arith.mulf %21, %31 : vector<8x32xf32>
    %33 = vector.broadcast %8 : vector<1x32xf32> to vector<8x32xf32>
    %34 = arith.addf %32, %33 : vector<8x32xf32>
    %cst_19 = arith.constant dense<0.000000e+00> : vector<8x32xf32>
    %35 = tpu.matmul %34, %3, %cst_19 {dimension_numbers = #tpu.dot_dimension_numbers<[1], [0], [0], [1], [0, 0, 1, 1], [], []>} : vector<8x32xf32>, vector<32x32xf32>, vector<8x32xf32> -> vector<8x32xf32>
    %36 = vector.broadcast %9 : vector<1x32xf32> to vector<8x32xf32>
    %37 = arith.addf %35, %36 : vector<8x32xf32>
    %38 = vector.extract_strided_slice %1 {offsets = [0, 0], sizes = [8, 1], strides = [1, 1]} : vector<8x2xf32> to vector<8x1xf32>
    %39 = vector.extract_strided_slice %4 {offsets = [0, 0], sizes = [1, 32], strides = [1, 1]} : vector<2x32xf32> to vector<1x32xf32>
    %40 = vector.broadcast %38 : vector<8x1xf32> to vector<8x32xf32>
    %41 = vector.broadcast %39 : vector<1x32xf32> to vector<8x32xf32>
    %42 = arith.mulf %40, %41 : vector<8x32xf32>
    %43 = arith.addf %37, %42 : vector<8x32xf32>
    %44 = vector.extract_strided_slice %1 {offsets = [0, 1], sizes = [8, 1], strides = [1, 1]} : vector<8x2xf32> to vector<8x1xf32>
    %45 = vector.extract_strided_slice %4 {offsets = [1, 0], sizes = [1, 32], strides = [1, 1]} : vector<2x32xf32> to vector<1x32xf32>
    %46 = vector.broadcast %44 : vector<8x1xf32> to vector<8x32xf32>
    %47 = vector.broadcast %45 : vector<1x32xf32> to vector<8x32xf32>
    %48 = arith.mulf %46, %47 : vector<8x32xf32>
    %49 = arith.addf %43, %48 : vector<8x32xf32>
    %cst_20 = arith.constant 0.000000e+00 : f32
    %50 = vector.broadcast %cst_20 : f32 to vector<8x32xf32>
    %51 = arith.maximumf %49, %50 : vector<8x32xf32>
    %52 = vector.broadcast %5 : vector<1x32xf32> to vector<8x32xf32>
    %53 = arith.mulf %51, %52 : vector<8x32xf32>
    %cst_21 = arith.constant dense<0.000000e+00> : vector<8xf32>
    %54 = vector.multi_reduction <add>, %53, %cst_21 [1] : vector<8x32xf32> to vector<8xf32>
    %55 = vector.shape_cast %54 : vector<8xf32> to vector<8x1xf32>
    %56 = vector.broadcast %10 : vector<1x1xf32> to vector<8x1xf32>
    %57 = arith.addf %55, %56 : vector<8x1xf32>
    %c0_22 = arith.constant 0 : index
    %c0_23 = arith.constant 0 : index
    %58 = vector.load %arg3[%c0_22, %c0_23] : memref<8x1xf32, #tpu.memory_space<vmem>>, vector<8x1xf32>
    tpu.vector_store %arg3[%c0_22, %c0_23], %57 {strides = array<i32>} : memref<8x1xf32, #tpu.memory_space<vmem>>, vector<8x1xf32>,
    return
  }
}

</mosaic_0001>

<bundles_post_ra>
// kernel: tpu_custom_call.1
= control target key start
LH: loop header
LB: loop body
LE: loop exit
PB: predicated region body
PF: predicated region fallthrough
CT: control target
= control target key end

     0   :  { %v304_v0 = vmov 0.0   ;;  %vm305_vm0 = vmmov 0   ;;  %vm34_vm1 = vcmask 195584   ;;  %v306_v9 = vmov 0   ;;  %s383_s2 = inlined_call_operand.vmem [shape: f32[112,32], index: 2, kind: input, shape index: {}]   ;;  %s384_s0 = inlined_call_operand.vmem [shape: f32[8,24], index: 0, kind: input, shape index: {}]   ;;  %s385_s1 = inlined_call_operand.vmem [shape: f32[8,2], index: 1, kind: input, shape index: {}]   ;;  %s386_s3 = inlined_call_operand.vmem [shape: f32[8,1], index: 3, kind: output, shape index: {}]  }
   0x1   :  { %276 = vmatprep.subr.mxu0 %v304_v0  ;;  %v18_v1 = vld [vmem:[%s383_s2 + $0x10] sm:$0xff]  ;;  %v17_v2 = vld [vmem:[%s383_s2 + $0x8] sm:$0xff]  ;;  %282 = vmatprep.mubr.msk.f32.mxu0 %vm305_vm0, %v304_v0  ;;  %v16_v3 = vld [vmem:[%s383_s2] sm:$0xff]  ;;  %v307_v11 = vmov 1   ;;  %vm109_vm2 = vcmask 261120   ;;  %v132_v36 = vlaneseq  ;;  %vm254_vm3 = vcmask 7168  }
   0x2   :  { %277 = vmatpush3.msra.mxu0 %v18_v1  ;;  %285 = vmatprep.subr.mxu1 %v304_v0  ;;  %v14_v4 = vld [vmem:[%s384_s0] sm:$0xff]  ;;  %v22_v5 = vld [vmem:[%s383_s2 + $0x30] sm:$0xff]  ;;  %v21_v6 = vld [vmem:[%s383_s2 + $0x28] sm:$0xff] }
   0x3   :  { %278 = vmatprep.subr.mxu0 %v304_v0  ;;  %293 = vmatprep.mubr.msk.f32.mxu1 %vm305_vm0, %v304_v0  ;;  %v20_v7 = vld [vmem:[%s383_s2 + $0x20] sm:$0xff]  ;;  %v19_v8 = vld [vmem:[%s383_s2 + $0x18] sm:$0xff]  ;;  %v260_v12 = vld [vmem:[%s383_s2 + $0x48] ss:$0 sm:$0xff]  ;;  %v133_v37 = vshrl.u32 %v132_v36, 7 }
   0x4   :  { %279 = vmatpush3.msra.mxu0 %v17_v2  ;;  %286 = vmatpush3.msra.mxu1 %v22_v5  ;;  %v15_v10 = vld [vmem:[%s385_s1] sm:$0xff]  ;;  %v26_v38 = vld [vmem:[%s383_s2 + $0x50] sm:$0x1]  ;;  %v262_v43 = vld [vmem:[%s383_s2 + $0x58] ss:$0 sm:$0xff] }
   0x5   :  { %280 = vmatprep.subr.mxu0 %v304_v0  ;;  %287 = vmatprep.subr.mxu1 %v304_v0  ;;  %v134_v39 = vsub.s32 0, %v133_v37  ;;  %v236_v47 = vsub.s32 1, %v133_v37  ;;  %v23_v48 = vld [vmem:[%s383_s2 + $0x38] sm:$0x3]  ;;  %v263_v51 = vld [vmem:[%s383_s2 + $0x60] ss:$0 sm:$0xff] }
   0x6   :  { %281 = vmatpush3.msra.mxu0 %v16_v3  ;;  %288 = vmatpush3.msra.mxu1 %v21_v6  ;;  %v265_v60 = vld [vmem:[%s383_s2 + $0x40] ss:$0 sm:$0xff] }
   0x7   :  { %283 = vmatmul.mubr.msk.f32.vlgmr.msra.gmra.mxu0 %vm34_vm1, %v14_v4  ;;  %289 = vmatprep.subr.mxu1 %v304_v0  ;;  %v227_v49 = vrot.slane %v23_v48, %v134_v39  ;;  %v237_v50 = vrot.slane %v23_v48, %v236_v47 }
   0x8   :  { %290 = vmatpush3.msra.mxu1 %v20_v7  ;;  %300 = vset.pattern.permute.xlu0 %v306_v9 }
   0x9   :  { %291 = vmatprep.subr.mxu1 %v304_v0  ;;  %221 = vperm.xlu0 %300, %v15_v10   ;;  %v266_v0 = vld [vmem:[%s383_s2 + $0x68] ss:$0 sm:$0xff] }
   0xa   :  { %292 = vmatpush3.msra.mxu1 %v19_v8 }
   0xd   :  { %301 = vset.pattern.permute.xlu0 %v307_v11 }
   0xe   :  { %231 = vperm.xlu0 %301, %v15_v10  }
  0x84   :  { %v222_v46 = vpop.permute.xlu0 %221 }
  0x85   :  { %v228_v54 = vmul.f32 %v227_v49, %v222_v46 }
  0x89   :  { %v232_v52 = vpop.permute.xlu0 %231 }
  0x8a   :  { %v238_v56 = vmul.f32 %v237_v50, %v232_v52 }
  0xc7   :  { %v104_v13 = vpop.f32.mrf.mxu0 }
  0xc8   :  { %v105_v14 = vadd.f32 %v260_v12, %v104_v13 }
  0xc9   :  { %v284_v15 = vpop.f32.mrf.mxu0 }
  0xca   :  { %v108_v16 = vmax.f32 %v105_v14, 0.0 }
  0xcc   :  { %v110_v17 = vsel %vm109_vm2, %v108_v16, 0.0 }
  0xcd   :  { %v111_v18 = vrot.slane %v110_v17, 4 }
  0xcf   :  { %v112_v19 = vadd.f32 %v111_v18, %v110_v17 }
  0xd1   :  { %v113_v20 = vrot.slane %v112_v19, 2 }
  0xd3   :  { %v114_v21 = vadd.f32 %v113_v20, %v112_v19 }
  0xd5   :  { %v115_v22 = vrot.slane %v114_v21, 1 }
  0xd7   :  { %v116_v23 = vadd.f32 %v115_v22, %v114_v21 }
  0xd9   :  { %v118_v24 = vmul.f32 0.125, %v116_v23 }
  0xdb   :  { %v119_v25 = vsub.f32 %v108_v16, %v118_v24 }
  0xdd   :  { %v120_v26 = vmul.f32 %v119_v25, %v119_v25 }
  0xdf   :  { %v121_v27 = vsel %vm109_vm2, %v120_v26, 0.0 }
  0xe0   :  { %v122_v28 = vrot.slane %v121_v27, 4 }
  0xe2   :  { %v123_v29 = vadd.f32 %v122_v28, %v121_v27 }
  0xe4   :  { %v124_v30 = vrot.slane %v123_v29, 2 }
  0xe6   :  { %v125_v31 = vadd.f32 %v124_v30, %v123_v29 }
  0xe8   :  { %v126_v32 = vrot.slane %v125_v31, 1 }
  0xea   :  { %v127_v33 = vadd.f32 %v126_v32, %v125_v31 }
  0xec   :  { %v128_v34 = vmul.f32 0.125, %v127_v33 }
  0xee   :  { %v129_v35 = vadd.f32 1e-05, %v128_v34 }
  0xf0   :  { %302 = vrsqrt.f32 %v129_v35 }
  0xfd   :  { %v303_v40 = vpop.eup %302 }
  0xfe   :  { %v131_v41 = vmul.f32 %v303_v40, %v26_v38 }
 0x100   :  { %v135_v42 = vrot.slane %v131_v41, %v134_v39 }
 0x102   :  { %v136_v44 = vmul.f32 %v135_v42, %v119_v25 }
 0x104   :  { %v141_v45 = vadd.f32 %v262_v43, %v136_v44 }
 0x106   :  { %294 = vmatmul.mubr.msk.f32.vlgmr.msra.gmra.mxu1 %vm109_vm2, %v141_v45 }
 0x1c6   :  { %v215_v53 = vpop.f32.mrf.mxu1 }
 0x1c7   :  { %v216_v55 = vadd.f32 %v263_v51, %v215_v53 }
 0x1c8   :  { %v295_v57 = vpop.f32.mrf.mxu1 }
 0x1c9   :  { %v229_v58 = vadd.f32 %v228_v54, %v216_v55 }
 0x1cb   :  { %v239_v59 = vadd.f32 %v238_v56, %v229_v58 }
 0x1cd   :  { %v240_v61 = vmax.f32 %v239_v59, 0.0 }
 0x1cf   :  { %v245_v62 = vmul.f32 %v265_v60, %v240_v61 }
 0x1d1   :  { %v246_v63 = vsel %vm109_vm2, %v245_v62, 0.0 }
 0x1d2   :  { %247 = vadd.xlane.f32.xlu1 %v246_v63 }
 0x25b   :  { %v248_v1 = vpop.xlane.xlu1 %247 }
 0x25c   :  { %v253_v2 = vadd.f32 %v266_v0, %v248_v1 }
 0x25e   :  { %255 = vst.msk [vmem:[%s386_s3] sm:$0xff] %vm254_vm3, %v253_v2 }

</bundles_post_ra>
